<compile_context>
chip_gen: v6e
topology: v6e:2x2x1
jax: 0.10.0
libtpu: 0.0.40
codegen_flags: <defaults>
</compile_context>

<pallas_src>
import jax
import jax.numpy as jnp
from jax.experimental import pallas as pl
from jax.experimental.pallas import tpu as pltpu


def _ceil_to(x, m):
    return ((x + m - 1) // m) * m


def soundmlp_kernel(x_ref, w1_ref, b1_ref, w2_ref, b2_ref, o_ref):
    # fc1: bf16 x / w1 on the MXU, f32 accumulation.  [TB, D] @ [D, H]
    h = jnp.dot(x_ref[...], w1_ref[...], preferred_element_type=jnp.float32)
    h = h + b1_ref[...]  # f32 bias add (VPU; v5e has no bf16 VPU)
    # sigmoid = 1 / (1 + exp(-h)): exp and approximate reciprocal both go to
    # the EUP slot, which is otherwise idle here.
    h = pl.reciprocal(1.0 + jnp.exp(-h), approx=True)
    # fc2: cast activations once to bf16 for the MXU; output is a lane-dense
    # 128-wide slab (w2/b2 are zero-padded in the wrapper).
    out = jnp.dot(h.astype(w2_ref.dtype), w2_ref[...],
                  preferred_element_type=jnp.float32)
    out = out + b2_ref[...]
    o_ref[...] = out.astype(o_ref.dtype)


def soundmlp_forward(x, w1_t, b1, w2_t, b2, *, block_b=1024,
                     compute_dtype=jnp.bfloat16):
    """Fused SoundMLP forward.

    x: [B, D] f32; w1_t: [D, H]; b1: [1, H]; w2_t: [H, O]; b2: [1, O].
    Returns [B, O] in x.dtype.
    """
    B, D = x.shape
    H = w1_t.shape[1]
    O = w2_t.shape[1]
    O_PAD = 128  # lane-dense output width (avoids masked partial stores)

    # --- batch tiling -------------------------------------------------------
    # For small batches use a single full block (block == full array dim is
    # always a legal BlockSpec); otherwise tile at block_b rows (multiple of
    # 128) and zero-pad the batch so the grid divides evenly.
    if B <= block_b:
        block_b_eff = B
        B_pad = B
    else:
        block_b_eff = block_b
        B_pad = _ceil_to(B, block_b_eff)

    # --- dtype / padding plumbing (outside the kernel) ----------------------
    # Cast the HBM-streamed operands to bf16 to halve bandwidth; biases stay
    # f32 for the elementwise path.  Pad fc2 weights/bias to 128 output lanes.
    x_c = x.astype(compute_dtype)
    if B_pad != B:
        x_c = jnp.pad(x_c, ((0, B_pad - B), (0, 0)))
    w1_c = w1_t.astype(compute_dtype)
    b1_f = b1.astype(jnp.float32)
    w2_p = jnp.pad(w2_t.astype(compute_dtype), ((0, 0), (0, O_PAD - O)))
    b2_p = jnp.pad(b2.astype(jnp.float32), ((0, 0), (0, O_PAD - O)))

    grid = (B_pad // block_b_eff,)

    out_padded = pl.pallas_call(
        soundmlp_kernel,
        out_shape=jax.ShapeDtypeStruct((B_pad, O_PAD), x.dtype),
        grid_spec=pltpu.PrefetchScalarGridSpec(
            num_scalar_prefetch=0,
            grid=grid,
            in_specs=[
                # x: streamed per batch tile (the only big HBM stream).
                pl.BlockSpec((block_b_eff, D), lambda i: (i, 0)),
                # weights / biases: resident, same block every step.
                pl.BlockSpec((D, H), lambda i: (0, 0)),
                pl.BlockSpec((1, H), lambda i: (0, 0)),
                pl.BlockSpec((H, O_PAD), lambda i: (0, 0)),
                pl.BlockSpec((1, O_PAD), lambda i: (0, 0)),
            ],
            out_specs=pl.BlockSpec((block_b_eff, O_PAD), lambda i: (i, 0)),
        ),
        compiler_params=pltpu.CompilerParams(
            # Shards the batch grid across both v7x TensorCores; near-neutral
            # (but harmless) on single-TC v5e/v6e.
            dimension_semantics=("parallel",),
        ),
    )(x_c, w1_c, b1_f, w2_p, b2_p)

    # Strip batch padding and the lane padding of the 2-wide logits.
    return out_padded[:B, :O]


def init_params(key, input_size, hidden=256, out=2, dtype=jnp.float32):
    """Deterministic init mimicking nn.Linear's U(-1/sqrt(fan_in), +1/sqrt(fan_in))."""
    k1, k2, k3, k4 = jax.random.split(key, 4)
    bound1 = 1.0 / jnp.sqrt(input_size)
    bound2 = 1.0 / jnp.sqrt(hidden)
    # stored as (in, out) == PyTorch weight.T
    w1_t = jax.random.uniform(k1, (input_size, hidden), dtype, -bound1, bound1)
    b1 = jax.random.uniform(k2, (1, hidden), dtype, -bound1, bound1)
    w2_t = jax.random.uniform(k3, (hidden, out), dtype, -bound2, bound2)
    b2 = jax.random.uniform(k4, (1, out), dtype, -bound2, bound2)
    return w1_t, b1, w2_t, b2


if __name__ == "__main__":
    # Small shapes consistent with the module: hidden=256 and output=2 are
    # fixed by SoundMLP; input_size=512 is a small stand-in for 9156.
    B = 8
    INPUT_SIZE = 512
    HIDDEN = 256
    OUT = 2

    key = jax.random.PRNGKey(0)
    kx, kp = jax.random.split(key)
    x = jax.random.normal(kx, (B, INPUT_SIZE), jnp.float32)
    w1_t, b1, w2_t, b2 = init_params(kp, INPUT_SIZE, HIDDEN, OUT)

    out = soundmlp_forward(x, w1_t, b1, w2_t, b2)
    out = jax.block_until_ready(out)
    assert out.shape == (B, OUT)

    # Reference with the same bf16 input casts (matmuls accumulate in f32);
    # the in-kernel approximate reciprocal loosens the tolerance slightly.
    xb = x.astype(jnp.bfloat16).astype(jnp.float32)
    w1b = w1_t.astype(jnp.bfloat16).astype(jnp.float32)
    w2b = w2_t.astype(jnp.bfloat16).astype(jnp.float32)
    h_ref = jax.nn.sigmoid(xb @ w1b + b1)
    ref = h_ref.astype(jnp.bfloat16).astype(jnp.float32) @ w2b + b2

    assert jnp.allclose(out, ref, atol=5e-2, rtol=5e-2), (
        f"max abs err = {float(jnp.max(jnp.abs(out - ref)))}")

    print("KERNEL_OK")
</pallas_src>

<mosaic_0001>
module attributes {stable_mosaic.version = 11 : i64} {
  func.func @soundmlp_kernel(%arg0: i32, %arg1: memref<8x512xbf16, #tpu.memory_space<vmem>>, %arg2: memref<512x256xbf16, #tpu.memory_space<vmem>>, %arg3: memref<1x256xf32, #tpu.memory_space<vmem>>, %arg4: memref<256x128xbf16, #tpu.memory_space<vmem>>, %arg5: memref<1x128xf32, #tpu.memory_space<vmem>>, %arg6: memref<8x128xf32, #tpu.memory_space<vmem>>) attributes {dimension_semantics = [#tpu.dimension_semantics<parallel>], iteration_bounds = array<i64: 1>, scalar_prefetch = 0 : i64, scratch_operands = 0 : i64, tpu.core_type = #tpu.core_type<tc>, window_params = [{transform_indices = @transform_0, window_bounds = array<i64: 8, 512>}, {pipeline_mode = #tpu.pipeline_mode<synchronous>, transform_indices = @transform_1, window_bounds = array<i64: 512, 256>}, {pipeline_mode = #tpu.pipeline_mode<synchronous>, transform_indices = @transform_2, window_bounds = array<i64: 1, 256>}, {pipeline_mode = #tpu.pipeline_mode<synchronous>, transform_indices = @transform_3, window_bounds = array<i64: 256, 128>}, {pipeline_mode = #tpu.pipeline_mode<synchronous>, transform_indices = @transform_4, window_bounds = array<i64: 1, 128>}, {transform_indices = @transform_5, window_bounds = array<i64: 8, 128>}]} {
    %c0 = arith.constant 0 : index
    %c0_0 = arith.constant 0 : index
    %0 = vector.load %arg1[%c0, %c0_0] : memref<8x512xbf16, #tpu.memory_space<vmem>>, vector<8x512xbf16>
    %c0_1 = arith.constant 0 : index
    %c0_2 = arith.constant 0 : index
    %1 = vector.load %arg2[%c0_1, %c0_2] : memref<512x256xbf16, #tpu.memory_space<vmem>>, vector<512x256xbf16>
    %cst = arith.constant dense<0.000000e+00> : vector<8x256xf32>
    %2 = tpu.matmul %0, %1, %cst {dimension_numbers = #tpu.dot_dimension_numbers<[1], [0], [0], [1], [0, 0, 1, 1], [], []>} : vector<8x512xbf16>, vector<512x256xbf16>, vector<8x256xf32> -> vector<8x256xf32>
    %c0_3 = arith.constant 0 : index
    %c0_4 = arith.constant 0 : index
    %3 = vector.load %arg3[%c0_3, %c0_4] : memref<1x256xf32, #tpu.memory_space<vmem>>, vector<1x256xf32>
    %4 = vector.broadcast %3 : vector<1x256xf32> to vector<8x256xf32>
    %5 = arith.addf %2, %4 : vector<8x256xf32>
    %cst_5 = arith.constant 0.000000e+00 : f32
    %6 = vector.broadcast %cst_5 : f32 to vector<8x256xf32>
    %7 = arith.subf %6, %5 : vector<8x256xf32>
    %8 = math.exp %7 : vector<8x256xf32>
    %cst_6 = arith.constant 1.000000e+00 : f32
    %9 = vector.broadcast %cst_6 : f32 to vector<8x256xf32>
    %10 = arith.addf %9, %8 : vector<8x256xf32>
    %11 = tpu.reciprocal %10 {approx = true} : vector<8x256xf32> -> vector<8x256xf32>
    %12 = arith.truncf %11 : vector<8x256xf32> to vector<8x256xbf16>
    %c0_7 = arith.constant 0 : index
    %c0_8 = arith.constant 0 : index
    %13 = vector.load %arg4[%c0_7, %c0_8] : memref<256x128xbf16, #tpu.memory_space<vmem>>, vector<256x128xbf16>
    %cst_9 = arith.constant dense<0.000000e+00> : vector<8x128xf32>
    %14 = tpu.matmul %12, %13, %cst_9 {dimension_numbers = #tpu.dot_dimension_numbers<[1], [0], [0], [1], [0, 0, 1, 1], [], []>} : vector<8x256xbf16>, vector<256x128xbf16>, vector<8x128xf32> -> vector<8x128xf32>
    %c0_10 = arith.constant 0 : index
    %c0_11 = arith.constant 0 : index
    %15 = vector.load %arg5[%c0_10, %c0_11] : memref<1x128xf32, #tpu.memory_space<vmem>>, vector<1x128xf32>
    %16 = vector.broadcast %15 : vector<1x128xf32> to vector<8x128xf32>
    %17 = arith.addf %14, %16 : vector<8x128xf32>
    %c0_12 = arith.constant 0 : index
    %c0_13 = arith.constant 0 : index
    %18 = vector.load %arg6[%c0_12, %c0_13] : memref<8x128xf32, #tpu.memory_space<vmem>>, vector<8x128xf32>
    tpu.vector_store %arg6[%c0_12, %c0_13], %17 {strides = array<i32>} : memref<8x128xf32, #tpu.memory_space<vmem>>, vector<8x128xf32>,
    return
  }
  func.func @transform_0(%arg0: i32) -> (i32, i32) {
    %c0_i32 = arith.constant 0 : i32
    %c0_i32_0 = arith.constant 0 : i32
    return %arg0, %c0_i32 : i32, i32
  }
  func.func @transform_1(%arg0: i32) -> (i32, i32) {
    %c0_i32 = arith.constant 0 : i32
    %c0_i32_0 = arith.constant 0 : i32
    %c0_i32_1 = arith.constant 0 : i32
    return %c0_i32, %c0_i32_0 : i32, i32
  }
  func.func @transform_2(%arg0: i32) -> (i32, i32) {
    %c0_i32 = arith.constant 0 : i32
    %c0_i32_0 = arith.constant 0 : i32
    %c0_i32_1 = arith.constant 0 : i32
    return %c0_i32, %c0_i32_0 : i32, i32
  }
  func.func @transform_3(%arg0: i32) -> (i32, i32) {
    %c0_i32 = arith.constant 0 : i32
    %c0_i32_0 = arith.constant 0 : i32
    %c0_i32_1 = arith.constant 0 : i32
    return %c0_i32, %c0_i32_0 : i32, i32
  }
  func.func @transform_4(%arg0: i32) -> (i32, i32) {
    %c0_i32 = arith.constant 0 : i32
    %c0_i32_0 = arith.constant 0 : i32
    %c0_i32_1 = arith.constant 0 : i32
    return %c0_i32, %c0_i32_0 : i32, i32
  }
  func.func @transform_5(%arg0: i32) -> (i32, i32) {
    %c0_i32 = arith.constant 0 : i32
    %c0_i32_0 = arith.constant 0 : i32
    return %arg0, %c0_i32 : i32, i32
  }
}

</mosaic_0001>

<bundles_post_ra>
// kernel: tpu_custom_call.1
= control target key start
LH: loop header
LB: loop body
LE: loop exit
PB: predicated region body
PF: predicated region fallthrough
CT: control target
= control target key end

     0   :  { %10 = vsyncpa [#allocation3], 0  ;;  %s1140_s0 = inlined_call_operand.hbm [shape: bf16[8,512], index: 0, kind: input, shape index: {}]   ;;  %s1141_s1 = inlined_call_operand.hbm [shape: bf16[512,256], index: 1, kind: input, shape index: {}]   ;;  %s1142_s2 = inlined_call_operand.vmem [shape: f32[1,256], index: 2, kind: input, shape index: {}]   ;;  %s1143_s3 = inlined_call_operand.hbm [shape: bf16[256,128], index: 3, kind: input, shape index: {}]   ;;  %s1144_s4 = inlined_call_operand.vmem [shape: f32[1,128], index: 4, kind: input, shape index: {}]   ;;  %s1145_s5 = inlined_call_operand.hbm [shape: f32[8,128], index: 5, kind: output, shape index: {}]  }
   0x1   :  { %11 = vsyncpa [#allocation6], 0 }
   0x2   :  { %12 = vsyncpa [#allocation4], 0  ;;  %s1084_s18 = smov [#allocation5]  }
   0x3   :  { %s28_s19 = sshll.u32 %s1084_s18, 4  ;;  %s29_s19 = int_to_ptr.vmem [resolvable:$true] %s28_s19 }
   0x4   :  { %s1006_s20 = scalar_lea.vmem %s29_s19, 8192  ;;  %p1011_p1 = scmp.lt.s32.totalorder %s29_s19, %s29_s19 }
   0x5   :  { %p1007_p0 = scmp.ne.s32.totalorder %s29_s19, %s1006_s20  ;;  %p1012_p2 = scmp.lt.s32.totalorder %s1006_s20, %s1006_s20 }
   0x7   :  { %p1013_p3 = por %p1012_p2, %p1011_p1 }
   0x9   :  { %p1014_p4 = pnand %p1013_p3, %p1007_p0 }
   0xb   :  { %1017 = shalt.err (!%p1014_p4)
}
   0xc   :  { %s1085_s21 = smov 128   ;;  %s1086_s22 = smov 8  }
   0xd   :  { %34 = dma.hbm_to_vmem [thread:$0]  %s1141_s1, 8192, %s29_s19, [#allocation6], %s1085_s21, %s1085_s21, %s1086_s22  }
   0xe   :  { %s1087_s25 = smov [#allocation2]   ;;  %s1088_s27 = smov [#allocation7]  }
   0xf   :  { %s19_s26 = sshll.u32 %s1087_s25, 4  ;;  %s42_s28 = sshll.u32 %s1088_s27, 4  ;;  %s20_s26 = int_to_ptr.vmem [resolvable:$true] %s19_s26  ;;  %s43_s28 = int_to_ptr.vmem [resolvable:$true] %s42_s28 }
  0x10   :  { %s1026_s29 = scalar_lea.vmem %s20_s26, 256  ;;  %p1031_p6 = scmp.lt.s32.totalorder %s20_s26, %s20_s26 }
  0x11   :  { %p1027_p5 = scmp.ne.s32.totalorder %s20_s26, %s1026_s29  ;;  %p1032_p7 = scmp.lt.s32.totalorder %s1026_s29, %s1026_s29 }
  0x13   :  { %p1033_p8 = por %p1032_p7, %p1031_p6 }
  0x15   :  { %p1034_p9 = pnand %p1033_p8, %p1027_p5 }
  0x17   :  { %1037 = shalt.err (!%p1034_p9)
}
  0x18   :  { %22 = dma.hbm_to_vmem [thread:$0]  %s1140_s0, 256, %s20_s26, [#allocation3]  }
  0x19   :  { %s1046_s7 = scalar_lea.vmem %s43_s28, 2048  ;;  %p1051_p11 = scmp.lt.s32.totalorder %s43_s28, %s43_s28 }
  0x1a   :  { %p1047_p10 = scmp.ne.s32.totalorder %s43_s28, %s1046_s7  ;;  %p1052_p12 = scmp.lt.s32.totalorder %s1046_s7, %s1046_s7 }
  0x1c   :  { %p1053_p13 = por %p1052_p12, %p1051_p11 }
  0x1e   :  { %p1054_p0 = pnand %p1053_p13, %p1047_p10 }
  0x20   :  { %1057 = shalt.err (!%p1054_p0)
}
  0x21   :  { %s1089_s1 = smov 64   ;;  %s1090_s8 = smov 4  }
  0x22   :  { %48 = dma.hbm_to_vmem [thread:$0]  %s1143_s3, 2048, %s43_s28, [#allocation6], %s1089_s1, %s1089_s1, %s1090_s8  }
  0x23   :  { %1078 = dma.done.wait [#allocation3], 256  }
  0x24   :  { %1079 = vsyncadd [#allocation3], 4294967040 }
  0x25   :  { %1080 = dma.done.wait [#allocation6], 10240  }
  0x26   :  { %1081 = vsyncadd [#allocation6], 4294957056  ;;  %v874_v0 = vld [vmem:[#allocation5 + $0x74] ss:$8 sps:$4 sm:$0xff]   ;;  %v878_v2 = vld [vmem:[#allocation5 + $0x70] ss:$8 sps:$4 sm:$0xff]  }
  0x27   :  { %v876_v1 = vld [vmem:[#allocation5 + $0x174] ss:$8 sps:$4 sm:$0xff]   ;;  %473 = vmatprep.subr.bf16.mxu0 %v874_v0  ;;  %v879_v3 = vld [vmem:[#allocation5 + $0x170] ss:$8 sps:$4 sm:$0xff]   ;;  %v880_v4 = vld [vmem:[#allocation5 + $0x64] ss:$8 sps:$4 sm:$0xff]  }
  0x28   :  { %514 = vmatprep.subr.bf16.mxu1 %v876_v1  ;;  %474 = vmatpush1.bf16.msra.mxu0 %v878_v2  ;;  %v882_v5 = vld [vmem:[#allocation5 + $0x164] ss:$8 sps:$4 sm:$0xff]   ;;  %v884_v6 = vld [vmem:[#allocation5 + $0x60] ss:$8 sps:$4 sm:$0xff]   ;;  %v886_v8 = vld [vmem:[#allocation5 + $0x54] ss:$8 sps:$4 sm:$0xff]  }
  0x29   :  { %515 = vmatpush1.bf16.msra.mxu1 %v879_v3  ;;  %475 = vmatprep.subr.bf16.mxu0 %v880_v4  ;;  %v885_v7 = vld [vmem:[#allocation5 + $0x160] ss:$8 sps:$4 sm:$0xff]   ;;  %v888_v9 = vld [vmem:[#allocation5 + $0x154] ss:$8 sps:$4 sm:$0xff]   ;;  %v890_v10 = vld [vmem:[#allocation5 + $0x50] ss:$8 sps:$4 sm:$0xff]  }
  0x2a   :  { %516 = vmatprep.subr.bf16.mxu1 %v882_v5  ;;  %v891_v11 = vld [vmem:[#allocation5 + $0x150] ss:$8 sps:$4 sm:$0xff]   ;;  %v892_v12 = vld [vmem:[#allocation5 + $0x44] ss:$8 sps:$4 sm:$0xff]   ;;  %v896_v14 = vld [vmem:[#allocation5 + $0x40] ss:$8 sps:$4 sm:$0xff]  }
  0x2b   :  { %v894_v13 = vld [vmem:[#allocation5 + $0x144] ss:$8 sps:$4 sm:$0xff]   ;;  %v897_v15 = vld [vmem:[#allocation5 + $0x140] ss:$8 sps:$4 sm:$0xff]   ;;  %v898_v16 = vld [vmem:[#allocation5 + $0x34] ss:$8 sps:$4 sm:$0xff]  }
  0x2c   :  { %476 = vmatpush1.bf16.msra.mxu0 %v884_v6  ;;  %v900_v17 = vld [vmem:[#allocation5 + $0x134] ss:$8 sps:$4 sm:$0xff]   ;;  %v902_v18 = vld [vmem:[#allocation5 + $0x30] ss:$8 sps:$4 sm:$0xff]   ;;  %v904_v20 = vld [vmem:[#allocation5 + $0x24] ss:$8 sps:$4 sm:$0xff]  }
  0x2d   :  { %517 = vmatpush1.bf16.msra.mxu1 %v885_v7  ;;  %477 = vmatprep.subr.bf16.mxu0 %v886_v8  ;;  %v903_v19 = vld [vmem:[#allocation5 + $0x130] ss:$8 sps:$4 sm:$0xff]   ;;  %v906_v21 = vld [vmem:[#allocation5 + $0x124] ss:$8 sps:$4 sm:$0xff]   ;;  %v908_v22 = vld [vmem:[#allocation5 + $0x20] ss:$8 sps:$4 sm:$0xff]  }
  0x2e   :  { %518 = vmatprep.subr.bf16.mxu1 %v888_v9  ;;  %v909_v23 = vld [vmem:[#allocation5 + $0x120] ss:$8 sps:$4 sm:$0xff]   ;;  %v910_v24 = vld [vmem:[#allocation5 + $0x14] ss:$8 sps:$4 sm:$0xff]   ;;  %v914_v26 = vld [vmem:[#allocation5 + $0x10] ss:$8 sps:$4 sm:$0xff]  }
  0x2f   :  { %v912_v25 = vld [vmem:[#allocation5 + $0x114] ss:$8 sps:$4 sm:$0xff]   ;;  %v915_v27 = vld [vmem:[#allocation5 + $0x110] ss:$8 sps:$4 sm:$0xff]   ;;  %v916_v28 = vld [vmem:[#allocation5 + $0x4] ss:$8 sps:$4 sm:$0xff]  }
  0x30   :  { %478 = vmatpush1.bf16.msra.mxu0 %v890_v10  ;;  %v918_v29 = vld [vmem:[#allocation5 + $0x104] ss:$8 sps:$4 sm:$0xff]   ;;  %v920_v30 = vld [vmem:[#allocation5] ss:$8 sps:$4 sm:$0xff]   ;;  %v922_v32 = vld [vmem:[#allocation5 + $0xf4] ss:$8 sps:$4 sm:$0xff]  }
  0x31   :  { %519 = vmatpush1.bf16.msra.mxu1 %v891_v11  ;;  %479 = vmatprep.subr.bf16.mxu0 %v892_v12  ;;  %v921_v31 = vld [vmem:[#allocation5 + $0x100] ss:$8 sps:$4 sm:$0xff]   ;;  %v924_v33 = vld [vmem:[#allocation5 + $0x1f4] ss:$8 sps:$4 sm:$0xff]   ;;  %v926_v34 = vld [vmem:[#allocation5 + $0xf0] ss:$8 sps:$4 sm:$0xff]  }
  0x32   :  { %520 = vmatprep.subr.bf16.mxu1 %v894_v13  ;;  %v927_v35 = vld [vmem:[#allocation5 + $0x1f0] ss:$8 sps:$4 sm:$0xff]   ;;  %v928_v36 = vld [vmem:[#allocation5 + $0xe4] ss:$8 sps:$4 sm:$0xff]   ;;  %v932_v38 = vld [vmem:[#allocation5 + $0xe0] ss:$8 sps:$4 sm:$0xff]  }
  0x33   :  { %v930_v37 = vld [vmem:[#allocation5 + $0x1e4] ss:$8 sps:$4 sm:$0xff]   ;;  %v933_v39 = vld [vmem:[#allocation5 + $0x1e0] ss:$8 sps:$4 sm:$0xff]   ;;  %v934_v40 = vld [vmem:[#allocation5 + $0xd4] ss:$8 sps:$4 sm:$0xff]  }
  0x34   :  { %480 = vmatpush1.bf16.msra.mxu0 %v896_v14  ;;  %v936_v41 = vld [vmem:[#allocation5 + $0x1d4] ss:$8 sps:$4 sm:$0xff]   ;;  %v938_v42 = vld [vmem:[#allocation5 + $0xd0] ss:$8 sps:$4 sm:$0xff]   ;;  %v940_v44 = vld [vmem:[#allocation5 + $0xc4] ss:$8 sps:$4 sm:$0xff]  }
  0x35   :  { %521 = vmatpush1.bf16.msra.mxu1 %v897_v15  ;;  %481 = vmatprep.subr.bf16.mxu0 %v898_v16  ;;  %v939_v43 = vld [vmem:[#allocation5 + $0x1d0] ss:$8 sps:$4 sm:$0xff]   ;;  %v942_v45 = vld [vmem:[#allocation5 + $0x1c4] ss:$8 sps:$4 sm:$0xff]   ;;  %v944_v46 = vld [vmem:[#allocation5 + $0xc0] ss:$8 sps:$4 sm:$0xff]  }
  0x36   :  { %522 = vmatprep.subr.bf16.mxu1 %v900_v17  ;;  %v945_v47 = vld [vmem:[#allocation5 + $0x1c0] ss:$8 sps:$4 sm:$0xff]   ;;  %v61_v48 = vld [vmem:[#allocation2] sm:$0xff]  ;;  %v62_v52 = vld [vmem:[#allocation2 + $0x8] sm:$0xff]  ;;  %s1091_s12 = smov [#allocation8]  }
  0x37   :  { %v946_v49 = vld [vmem:[#allocation5 + $0xb4] ss:$8 sps:$4 sm:$0xff]   ;;  %v760_v51 = vcombine.high %v61_v48, %v61_v48  ;;  %v762_v53 = vcombine.high %v62_v52, %v62_v52  ;;  %v950_v54 = vld [vmem:[#allocation5 + $0xb0] ss:$8 sps:$4 sm:$0xff]   ;;  %v952_v56 = vld [vmem:[#allocation5 + $0xa4] ss:$8 sps:$4 sm:$0xff]   ;;  %v759_v4 = vcombine.low %v61_v48, %v61_v48  ;;  %v761_v5 = vcombine.low %v62_v52, %v62_v52 }
  0x38   :  { %482 = vmatpush1.bf16.msra.mxu0 %v902_v18  ;;  %v948_v50 = vld [vmem:[#allocation5 + $0x1b4] ss:$8 sps:$4 sm:$0xff]   ;;  %v951_v55 = vld [vmem:[#allocation5 + $0x1b0] ss:$8 sps:$4 sm:$0xff]   ;;  %v954_v57 = vld [vmem:[#allocation5 + $0x1a4] ss:$8 sps:$4 sm:$0xff]  }
  0x39   :  { %523 = vmatpush1.bf16.msra.mxu1 %v903_v19  ;;  %483 = vmatprep.subr.bf16.mxu0 %v904_v20  ;;  %v956_v58 = vld [vmem:[#allocation5 + $0xa0] ss:$8 sps:$4 sm:$0xff]   ;;  %v958_v60 = vld [vmem:[#allocation5 + $0x94] ss:$8 sps:$4 sm:$0xff]   ;;  %v962_v62 = vld [vmem:[#allocation5 + $0x90] ss:$8 sps:$4 sm:$0xff]  }
  0x3a   :  { %524 = vmatprep.subr.bf16.mxu1 %v906_v21  ;;  %505 = vmatprep.mubr.bf16.mxu0 %v760_v51  ;;  %v957_v59 = vld [vmem:[#allocation5 + $0x1a0] ss:$8 sps:$4 sm:$0xff]   ;;  %v960_v61 = vld [vmem:[#allocation5 + $0x194] ss:$8 sps:$4 sm:$0xff]   ;;  %v963_v63 = vld [vmem:[#allocation5 + $0x190] ss:$8 sps:$4 sm:$0xff]  }
  0x3b   :  { %546 = vmatprep.mubr.bf16.mxu1 %v762_v53  ;;  %v964_v0 = vld [vmem:[#allocation5 + $0x84] ss:$8 sps:$4 sm:$0xff]   ;;  %v968_v2 = vld [vmem:[#allocation5 + $0x80] ss:$8 sps:$4 sm:$0xff]   ;;  %v974_v6 = vld [vmem:[#allocation7 + $0x78] sm:$0xff]   ;;  %s749_s13 = sshll.u32 %s1091_s12, 4  ;;  %s750_s13 = int_to_ptr.vmem [resolvable:$true] %s749_s13 }
  0x3c   :  { %484 = vmatpush1.bf16.msra.mxu0 %v908_v22  ;;  %v966_v1 = vld [vmem:[#allocation5 + $0x184] ss:$8 sps:$4 sm:$0xff]   ;;  %v969_v3 = vld [vmem:[#allocation5 + $0x180] ss:$8 sps:$4 sm:$0xff]   ;;  %v975_v7 = vld [vmem:[#allocation7 + $0x38] sm:$0xff]   ;;  %v129_v22 = vlaneseq  ;;  %s1058_s14 = scalar_lea.vmem %s750_s13, 128  ;;  %p1063_p2 = scmp.lt.s32.totalorder %s750_s13, %s750_s13 }
  0x3d   :  { %525 = vmatpush1.bf16.msra.mxu1 %v909_v23  ;;  %485 = vmatprep.subr.bf16.mxu0 %v910_v24  ;;  %v976_v8 = vld [vmem:[#allocation7 + $0x70] sm:$0xff]   ;;  %v978_v10 = vld [vmem:[#allocation7 + $0x68] sm:$0xff]   ;;  %v980_v12 = vld [vmem:[#allocation7 + $0x60] sm:$0xff]   ;;  %p1059_p1 = scmp.ne.s32.totalorder %s750_s13, %s1058_s14  ;;  %p1064_p3 = scmp.lt.s32.totalorder %s1058_s14, %s1058_s14 }
  0x3e   :  { %526 = vmatprep.subr.bf16.mxu1 %v912_v25  ;;  %v977_v9 = vld [vmem:[#allocation7 + $0x30] sm:$0xff]   ;;  %v979_v11 = vld [vmem:[#allocation7 + $0x28] sm:$0xff]   ;;  %v981_v13 = vld [vmem:[#allocation7 + $0x20] sm:$0xff]   ;;  %v130_v23 = vshrl.u32 %v129_v22, 7 }
  0x3f   :  { %v982_v14 = vld [vmem:[#allocation7 + $0x58] sm:$0xff]   ;;  %v984_v16 = vld [vmem:[#allocation7 + $0x50] sm:$0xff]   ;;  %v986_v18 = vld [vmem:[#allocation7 + $0x48] sm:$0xff]   ;;  %p1065_p4 = por %p1064_p3, %p1063_p2 }
  0x40   :  { %486 = vmatpush1.bf16.msra.mxu0 %v914_v26  ;;  %v983_v15 = vld [vmem:[#allocation7 + $0x18] sm:$0xff]   ;;  %v985_v17 = vld [vmem:[#allocation7 + $0x10] sm:$0xff]   ;;  %v987_v19 = vld [vmem:[#allocation7 + $0x8] sm:$0xff]   ;;  %v131_v24 = vsub.s32 0, %v130_v23  ;;  %v135_v26 = vsub.s32 1, %v130_v23 }
  0x41   :  { %527 = vmatpush1.bf16.msra.mxu1 %v915_v27  ;;  %487 = vmatprep.subr.bf16.mxu0 %v916_v28  ;;  %v988_v20 = vld [vmem:[#allocation7 + $0x40] sm:$0xff]   ;;  %v127_v25 = vld [vmem:[%s1142_s2] sm:$0x3]  ;;  %p1066_p5 = pnand %p1065_p4, %p1059_p1 }
  0x42   :  { %528 = vmatprep.subr.bf16.mxu1 %v918_v29  ;;  %v989_v21 = vld [vmem:[#allocation7] sm:$0xff]   ;;  %v132_v27 = vrot.slane %v127_v25, %v131_v24  ;;  %v136_v28 = vrot.slane %v127_v25, %v135_v26 }
  0x44   :  { %488 = vmatpush1.bf16.msra.mxu0 %v920_v30 }
  0x45   :  { %529 = vmatpush1.bf16.msra.mxu1 %v921_v31  ;;  %489 = vmatprep.subr.bf16.mxu0 %v922_v32 }
  0x46   :  { %530 = vmatprep.subr.bf16.mxu1 %v924_v33 }
  0x48   :  { %490 = vmatpush2.bf16.msra.mxu0 %v926_v34 }
  0x49   :  { %531 = vmatpush2.bf16.msra.mxu1 %v927_v35  ;;  %491 = vmatprep.subr.bf16.mxu0 %v928_v36 }
  0x4a   :  { %532 = vmatprep.subr.bf16.mxu1 %v930_v37 }
  0x4c   :  { %492 = vmatpush2.bf16.msra.mxu0 %v932_v38 }
  0x4d   :  { %533 = vmatpush2.bf16.msra.mxu1 %v933_v39  ;;  %493 = vmatprep.subr.bf16.mxu0 %v934_v40 }
  0x4e   :  { %534 = vmatprep.subr.bf16.mxu1 %v936_v41 }
  0x50   :  { %494 = vmatpush2.bf16.msra.mxu0 %v938_v42 }
  0x51   :  { %535 = vmatpush2.bf16.msra.mxu1 %v939_v43  ;;  %495 = vmatprep.subr.bf16.mxu0 %v940_v44 }
  0x52   :  { %536 = vmatprep.subr.bf16.mxu1 %v942_v45 }
  0x54   :  { %496 = vmatpush2.bf16.msra.mxu0 %v944_v46 }
  0x55   :  { %537 = vmatpush2.bf16.msra.mxu1 %v945_v47  ;;  %497 = vmatprep.subr.bf16.mxu0 %v946_v49 }
  0x56   :  { %538 = vmatprep.subr.bf16.mxu1 %v948_v50 }
  0x58   :  { %498 = vmatpush2.bf16.msra.mxu0 %v950_v54  ;;  %v827_v54 = vld [vmem:[%s1144_s4] ss:$0 sm:$0xff] }
  0x59   :  { %539 = vmatpush2.bf16.msra.mxu1 %v951_v55  ;;  %499 = vmatprep.subr.bf16.mxu0 %v952_v56 }
  0x5a   :  { %540 = vmatprep.subr.bf16.mxu1 %v954_v57 }
  0x5c   :  { %500 = vmatpush2.bf16.msra.mxu0 %v956_v58 }
  0x5d   :  { %541 = vmatpush2.bf16.msra.mxu1 %v957_v59  ;;  %501 = vmatprep.subr.bf16.mxu0 %v958_v60 }
  0x5e   :  { %542 = vmatprep.subr.bf16.mxu1 %v960_v61 }
  0x60   :  { %502 = vmatpush2.bf16.msra.mxu0 %v962_v62 }
  0x61   :  { %543 = vmatpush2.bf16.msra.mxu1 %v963_v63  ;;  %503 = vmatprep.subr.bf16.mxu0 %v964_v0 }
  0x62   :  { %544 = vmatprep.subr.bf16.mxu1 %v966_v1 }
  0x64   :  { %504 = vmatpush2.bf16.msra.mxu0 %v968_v2 }
  0x65   :  { %545 = vmatpush2.bf16.msra.mxu1 %v969_v3  ;;  %844 = vmatprep.subr.bf16.mxu0 %v974_v6 }
  0x67   :  { %506 = vmatmul.mubr.bf16.vlgmr.msra.gmra.mxu0 %v759_v4 }
  0x68   :  { %547 = vmatmul.mubr.bf16.vlgmr.msra.gmra.mxu1 %v761_v5  ;;  %845 = vmatpush3.bf16.msra.mxu0 %v975_v7 }
  0x69   :  { %846 = vmatprep.subr.bf16.mxu0 %v976_v8 }
  0x6c   :  { %847 = vmatpush3.bf16.msra.mxu0 %v977_v9 }
  0x6d   :  { %848 = vmatprep.subr.bf16.mxu0 %v978_v10 }
  0x70   :  { %849 = vmatpush3.bf16.msra.mxu0 %v979_v11 }
  0x71   :  { %850 = vmatprep.subr.bf16.mxu0 %v980_v12 }
  0x74   :  { %851 = vmatpush3.bf16.msra.mxu0 %v981_v13 }
  0x75   :  { %852 = vmatprep.subr.bf16.mxu0 %v982_v14 }
  0x78   :  { %853 = vmatpush3.bf16.msra.mxu0 %v983_v15 }
  0x79   :  { %854 = vmatprep.subr.bf16.mxu0 %v984_v16 }
  0x7c   :  { %855 = vmatpush3.bf16.msra.mxu0 %v985_v17 }
  0x7d   :  { %856 = vmatprep.subr.bf16.mxu0 %v986_v18 }
  0x80   :  { %857 = vmatpush3.bf16.msra.mxu0 %v987_v19 }
  0x81   :  { %858 = vmatprep.subr.bf16.mxu0 %v988_v20 }
  0x84   :  { %859 = vmatpush3.bf16.msra.mxu0 %v989_v21 }
 0x127   :  { %v507_v29 = vpop.f32.mrf.mxu0 }
 0x128   :  { %v548_v30 = vpop.f32.mrf.mxu1  ;;  %v508_v31 = vadd.f32 %v507_v29, %v132_v27 }
 0x129   :  { %v509_v32 = vpop.f32.mrf.mxu0 }
 0x12a   :  { %v550_v33 = vpop.f32.mrf.mxu1  ;;  %v549_v34 = vadd.f32 %v548_v30, %v508_v31  ;;  %v510_v35 = vadd.f32 %v509_v32, %v136_v28 }
 0x12b   :  { %v511_v36 = vpop.f32.mrf.mxu0 }
 0x12c   :  { %v552_v37 = vpop.f32.mrf.mxu1  ;;  %v555_v38 = vsub.f32 0.0, %v549_v34  ;;  %v551_v39 = vadd.f32 %v550_v33, %v510_v35 }
 0x12d   :  { %v512_v40 = vpop.f32.mrf.mxu0 }
 0x12e   :  { %v553_v41 = vpop.f32.mrf.mxu1  ;;  %v557_v42 = vmul.f32 1.442695, %v555_v38  ;;  %v556_v43 = vsub.f32 0.0, %v551_v39 }
 0x130   :  { %990 = vpow2.f32 %v557_v42  ;;  %v559_v44 = vmul.f32 1.442695, %v556_v43 }
 0x132   :  { %992 = vpow2.f32 %v559_v44 }
 0x13d   :  { %v991_v45 = vpop.eup %990 }
 0x13e   :  { %v561_v46 = vadd.f32 1.0, %v991_v45 }
 0x13f   :  { %v993_v47 = vpop.eup %992 }
 0x140   :  { %v562_v48 = vadd.f32 1.0, %v993_v47  ;;  %994 = vrcp.f32 %v561_v46 }
 0x142   :  { %996 = vrcp.f32 %v562_v48 }
 0x14d   :  { %v995_v49 = vpop.eup %994 }
 0x14e   :  { %v565_v52 = vpack.c.bf16 %v995_v49, %v995_v49 }
 0x14f   :  { %v997_v50 = vpop.eup %996 }
 0x150   :  { %v566_v51 = vpack.c.bf16 %v997_v50, %v997_v50 }
 0x152   :  { %734 = vmatprep.mubr.bf16.mxu0 %v566_v51 }
 0x153   :  { %735 = vmatmul.mubr.bf16.vlgmr.msra.gmra.mxu0 %v565_v52 }
 0x213   :  { %v860_v53 = vpop.f32.mrf.mxu0 }
 0x215   :  { %v861_v55 = vpop.f32.mrf.mxu0 }
 0x216   :  { %v862_v56 = vadd.f32 %v861_v55, %v860_v53 }
 0x217   :  { %v863_v57 = vpop.f32.mrf.mxu0 }
 0x218   :  { %v737_v58 = vadd.f32 %v862_v56, %v827_v54 }
 0x219   :  { %v864_v59 = vpop.f32.mrf.mxu0 }
 0x21a   :  { %742 = vst [vmem:[#allocation8] sm:$0xff] %v737_v58 }
 0x21b   :  { %1069 = shalt.err (!%p1066_p5)
}
 0x21c   :  { %752 = dma.vmem_to_hbm [thread:$0]  %s750_s13, 128, %s1145_s5, [#allocation4]  }
 0x21d   :  { %1082 = dma.done.wait [#allocation4], 128  }
 0x21e   :  { %1083 = vsyncadd [#allocation4], 4294967168 }
 0x21f   :  { %756 = vsyncpa [#allocation3], 1 }
 0x220   :  { %757 = vsyncpa [#allocation6], 1 }
 0x221   :  { %758 = vsyncpa [#allocation4], 1 }

</bundles_post_ra>
